<compile_context>
chip_gen: v5e
topology: v5e:2x2
jax: 0.10.0
libtpu: 0.0.40
codegen_flags: <defaults>
</compile_context>

<pallas_src>
import jax
import jax.numpy as jnp
from jax.experimental import pallas as pl
from jax.experimental.pallas import tpu as pltpu


def _round_up(x, m):
    return (x + m - 1) // m * m


def gcn_kernel(x_ref, adj_ref, prm_ref, out_ref):
    """One destination-row tile of the fused GCN forward.

    x_ref   : [Nsrc, 1]  f32   node features for all source nodes (resident)
    adj_ref : [TM, Nsrc] bf16  raw in-edge counts for this dst tile (streamed)
    prm_ref : [4, 16]    f32   packed params:
                               row0 = w1, row1 = b1, row2 = w2,
                               row3 = [ws0, ws1, 0, b2*ws0, b2*ws1, 1, 0...]
    out_ref : [TM, 2]    f32
    """
    # Per-node MLP for all Nsrc sources, fused with lin_l of the SAGEConv.
    # O(N*16) VPU work, recomputed per dst tile — cheap filler that hides
    # under the O(TM*N) A-tile DMA.
    x = x_ref[...]                                        # [Nsrc, 1]
    p = prm_ref[...]
    w1 = p[0:1, :]                                        # [1, 16]
    b1 = p[1:2, :]                                        # [1, 16]
    w2 = p[2:3, :]                                        # [1, 16]
    ws3 = p[3:4, 0:3]                                     # [ws0, ws1, 0]
    bw3 = p[3:4, 3:6]                                     # [b2*ws0, b2*ws1, 1]

    h = jnp.maximum(x * w1 + b1, 0.0)                     # lin1 + relu -> [Nsrc, 16]
    s = jnp.sum(h * w2, axis=-1, keepdims=True)           # lin2 pre-bias -> [Nsrc, 1]
    rhs = s * ws3 + bw3                                   # [Nsrc, 3]; col 2 == 1.0

    # One MXU pass per tile:
    #   cols 0:2 -> A_tile @ (lin2(h) @ Wsage.T)      (un-normalized aggregate)
    #   col  2   -> A_tile @ 1 = in-degree of each dst (row-sum of counts)
    # A holds raw counts (exact in bf16); upcast to f32 on the VPU so the
    # matmul + normalization lose no precision.
    a = adj_ref[...].astype(jnp.float32)                  # [TM, Nsrc]
    agg = jnp.dot(a, rhs, preferred_element_type=jnp.float32)   # [TM, 3]
    deg = jnp.maximum(agg[:, 2:3], 1.0)                   # isolated nodes -> divide by 1
    out_ref[...] = agg[:, 0:2] / deg


def gcn_forward(x, edge_index, params, *, max_tile_bytes=8 << 20):
    """x: [N, 1] float32, edge_index: [2, E] int32 (row 0 = src, row 1 = dst)."""
    N = x.shape[0]
    src = edge_index[0]
    dst = edge_index[1]

    # Destination-row tile size: keep the bf16 A tile <= ~8 MiB per pipeline
    # step so double buffering fits v7x's 64 MiB VMEM and v5e's small scoped
    # default; must be a multiple of 8 (sublanes).
    tm = 512
    while tm > 8 and tm * N * 2 > max_tile_bytes:
        tm //= 2
    tm = min(tm, _round_up(N, 8))
    n_pad = _round_up(N, tm)
    n_tiles = n_pad // tm

    # Graph structure as raw (un-normalized) in-edge counts, bf16 (exact for
    # multiplicities <= 256). Built O(E); mean-normalization and the degree
    # itself are produced inside the kernel, so there is no O(N^2) elementwise
    # pass and no separate degree array in the wrapper.
    # For a static graph, `a` can be built once and reused across calls.
    # TODO(synk): for large/dynamic graphs replace the dense A with a CSR
    # scalar-prefetch gather (PrefetchScalarGridSpec + pl.Element / manual DMA)
    # so HBM traffic is O(E + N*F) instead of O(N^2).
    a = jnp.zeros((n_pad, N), jnp.bfloat16).at[dst, src].add(1.0)

    # Pack the five tiny parameter tensors into ONE small f32 operand
    # (fewer padded (8,128) VMEM tiles / DMA descriptors).
    w1, b1, w2, b2, ws = params
    ws_row = ws.reshape(2).astype(jnp.float32)                 # row of Wsage.T
    b2s = b2.reshape(()).astype(jnp.float32)
    row3 = jnp.concatenate([
        ws_row, jnp.zeros((1,), jnp.float32),                  # [ws0, ws1, 0]
        b2s * ws_row, jnp.ones((1,), jnp.float32),             # [b2*ws0, b2*ws1, 1]
        jnp.zeros((10,), jnp.float32),
    ])
    prm = jnp.stack([
        w1.reshape(16).astype(jnp.float32),
        b1.reshape(16).astype(jnp.float32),
        w2.reshape(16).astype(jnp.float32),
        row3,
    ])                                                          # [4, 16]

    x_f32 = x.astype(jnp.float32)

    # VMEM budget: double-buffered bf16 A tile dominates; x/out blocks are
    # lane-padded to 128 in VMEM, so account for that; generous headroom but
    # capped well under v7x's 64 MiB physical VMEM.
    a_buf = tm * N * 2
    x_buf = _round_up(N, 8) * 128 * 4
    o_buf = tm * 128 * 4
    vmem_bytes = 2 * a_buf + 2 * x_buf + 2 * o_buf + (4 << 20)
    vmem_bytes = int(min(max(vmem_bytes, 8 << 20), 48 << 20))

    out = pl.pallas_call(
        gcn_kernel,
        out_shape=jax.ShapeDtypeStruct((n_pad, 2), jnp.float32),
        grid_spec=pltpu.PrefetchScalarGridSpec(
            num_scalar_prefetch=0,
            grid=(n_tiles,),
            in_specs=[
                pl.BlockSpec((N, 1), lambda i: (0, 0)),    # x (resident across steps)
                pl.BlockSpec((tm, N), lambda i: (i, 0)),   # A tile (streamed)
                pl.BlockSpec((4, 16), lambda i: (0, 0)),   # packed parameters
            ],
            out_specs=pl.BlockSpec((tm, 2), lambda i: (i, 0)),
        ),
        compiler_params=pltpu.CompilerParams(
            dimension_semantics=("parallel",),             # v7x: 2 TCs split dst tiles
            vmem_limit_bytes=vmem_bytes,
        ),
    )(x_f32, a, prm)
    return out[:N]


def gcn_reference(x, edge_index, params):
    w1, b1, w2, b2, ws = params
    N = x.shape[0]
    src, dst = edge_index[0], edge_index[1]
    h = jnp.maximum(x @ w1.T + b1, 0.0)
    h2 = h @ w2.T + b2
    a = jnp.zeros((N, N), jnp.float32).at[dst, src].add(1.0)
    deg = jnp.sum(a, axis=1, keepdims=True)
    agg = (a / jnp.maximum(deg, 1.0)) @ h2
    return agg @ ws.T


if __name__ == "__main__":
    key = jax.random.PRNGKey(0)
    N, E = 64, 256
    k = jax.random.split(key, 8)

    # Inputs (num_node_features = 1, as the module's forward requires).
    x = jax.random.normal(k[0], (N, 1), jnp.float32)
    src = jax.random.randint(k[1], (E,), 0, N, jnp.int32)
    dst = jax.random.randint(k[2], (E,), 0, N, jnp.int32)
    edge_index = jnp.stack([src, dst], axis=0)

    # Deterministic parameters (shapes follow torch Linear / SAGEConv lin_l).
    w1 = jax.random.uniform(k[3], (16, 1), jnp.float32, -1.0, 1.0)     # Linear(1, 16)
    b1 = jax.random.uniform(k[4], (16,), jnp.float32, -1.0, 1.0)
    w2 = jax.random.uniform(k[5], (1, 16), jnp.float32, -0.25, 0.25)   # Linear(16, 1)
    b2 = jax.random.uniform(k[6], (1,), jnp.float32, -0.25, 0.25)
    ws = jax.random.uniform(k[7], (2, 1), jnp.float32, -1.0, 1.0)      # SAGEConv lin_l

    params = (w1, b1, w2, b2, ws)

    out = gcn_forward(x, edge_index, params)
    out = jax.block_until_ready(out)

    ref = gcn_reference(x, edge_index, params)
    assert out.shape == (N, 2)
    assert jnp.allclose(out, ref, atol=1e-5, rtol=1e-5), float(jnp.max(jnp.abs(out - ref)))
    print("KERNEL_OK")
</pallas_src>

<mosaic_0001>
module attributes {stable_mosaic.version = 11 : i64} {
  func.func @gcn_kernel(%arg0: i32, %arg1: memref<64x1xf32, #tpu.memory_space<vmem>>, %arg2: memref<64x64xbf16, #tpu.memory_space<vmem>>, %arg3: memref<4x16xf32, #tpu.memory_space<vmem>>, %arg4: memref<64x2xf32, #tpu.memory_space<vmem>>) attributes {dimension_semantics = [#tpu.dimension_semantics<parallel>], iteration_bounds = array<i64: 1>, scalar_prefetch = 0 : i64, scratch_operands = 0 : i64, tpu.core_type = #tpu.core_type<tc>, window_params = [{pipeline_mode = #tpu.pipeline_mode<synchronous>, transform_indices = @transform_0, window_bounds = array<i64: 64, 1>}, {transform_indices = @transform_1, window_bounds = array<i64: 64, 64>}, {pipeline_mode = #tpu.pipeline_mode<synchronous>, transform_indices = @transform_2, window_bounds = array<i64: 4, 16>}, {transform_indices = @transform_3, window_bounds = array<i64: 64, 2>}]} {
    %c0 = arith.constant 0 : index
    %c0_0 = arith.constant 0 : index
    %0 = vector.load %arg1[%c0, %c0_0] : memref<64x1xf32, #tpu.memory_space<vmem>>, vector<64x1xf32>
    %c0_1 = arith.constant 0 : index
    %c0_2 = arith.constant 0 : index
    %1 = vector.load %arg3[%c0_1, %c0_2] : memref<4x16xf32, #tpu.memory_space<vmem>>, vector<4x16xf32>
    %2 = vector.extract_strided_slice %1 {offsets = [0, 0], sizes = [1, 16], strides = [1, 1]} : vector<4x16xf32> to vector<1x16xf32>
    %3 = vector.extract_strided_slice %1 {offsets = [1, 0], sizes = [1, 16], strides = [1, 1]} : vector<4x16xf32> to vector<1x16xf32>
    %4 = vector.extract_strided_slice %1 {offsets = [2, 0], sizes = [1, 16], strides = [1, 1]} : vector<4x16xf32> to vector<1x16xf32>
    %5 = vector.extract_strided_slice %1 {offsets = [3, 0], sizes = [1, 3], strides = [1, 1]} : vector<4x16xf32> to vector<1x3xf32>
    %6 = vector.extract_strided_slice %1 {offsets = [3, 3], sizes = [1, 3], strides = [1, 1]} : vector<4x16xf32> to vector<1x3xf32>
    %7 = vector.broadcast %0 : vector<64x1xf32> to vector<64x16xf32>
    %8 = vector.broadcast %2 : vector<1x16xf32> to vector<64x16xf32>
    %9 = arith.mulf %7, %8 : vector<64x16xf32>
    %10 = vector.broadcast %3 : vector<1x16xf32> to vector<64x16xf32>
    %11 = arith.addf %9, %10 : vector<64x16xf32>
    %cst = arith.constant 0.000000e+00 : f32
    %12 = vector.broadcast %cst : f32 to vector<64x16xf32>
    %13 = arith.maximumf %11, %12 : vector<64x16xf32>
    %14 = vector.broadcast %4 : vector<1x16xf32> to vector<64x16xf32>
    %15 = arith.mulf %13, %14 : vector<64x16xf32>
    %cst_3 = arith.constant dense<0.000000e+00> : vector<64xf32>
    %16 = vector.multi_reduction <add>, %15, %cst_3 [1] : vector<64x16xf32> to vector<64xf32>
    %17 = vector.shape_cast %16 : vector<64xf32> to vector<64x1xf32>
    %18 = vector.broadcast %17 : vector<64x1xf32> to vector<64x3xf32>
    %19 = vector.broadcast %5 : vector<1x3xf32> to vector<64x3xf32>
    %20 = arith.mulf %18, %19 : vector<64x3xf32>
    %21 = vector.broadcast %6 : vector<1x3xf32> to vector<64x3xf32>
    %22 = arith.addf %20, %21 : vector<64x3xf32>
    %c0_4 = arith.constant 0 : index
    %c0_5 = arith.constant 0 : index
    %23 = vector.load %arg2[%c0_4, %c0_5] : memref<64x64xbf16, #tpu.memory_space<vmem>>, vector<64x64xbf16>
    %24 = arith.extf %23 : vector<64x64xbf16> to vector<64x64xf32>
    %cst_6 = arith.constant dense<0.000000e+00> : vector<64x3xf32>
    %25 = tpu.matmul %24, %22, %cst_6 {dimension_numbers = #tpu.dot_dimension_numbers<[1], [0], [0], [1], [0, 0, 1, 1], [], []>} : vector<64x64xf32>, vector<64x3xf32>, vector<64x3xf32> -> vector<64x3xf32>
    %26 = vector.extract_strided_slice %25 {offsets = [0, 2], sizes = [64, 1], strides = [1, 1]} : vector<64x3xf32> to vector<64x1xf32>
    %cst_7 = arith.constant 1.000000e+00 : f32
    %27 = vector.broadcast %cst_7 : f32 to vector<64x1xf32>
    %28 = arith.maximumf %26, %27 : vector<64x1xf32>
    %29 = vector.extract_strided_slice %25 {offsets = [0, 0], sizes = [64, 2], strides = [1, 1]} : vector<64x3xf32> to vector<64x2xf32>
    %30 = vector.broadcast %28 : vector<64x1xf32> to vector<64x2xf32>
    %31 = arith.divf %29, %30 : vector<64x2xf32>
    %c0_8 = arith.constant 0 : index
    %c0_9 = arith.constant 0 : index
    %32 = vector.load %arg4[%c0_8, %c0_9] : memref<64x2xf32, #tpu.memory_space<vmem>>, vector<64x2xf32>
    tpu.vector_store %arg4[%c0_8, %c0_9], %31 {strides = array<i32>} : memref<64x2xf32, #tpu.memory_space<vmem>>, vector<64x2xf32>,
    return
  }
  func.func @transform_0(%arg0: i32) -> (i32, i32) {
    %c0_i32 = arith.constant 0 : i32
    %c0_i32_0 = arith.constant 0 : i32
    %c0_i32_1 = arith.constant 0 : i32
    return %c0_i32, %c0_i32_0 : i32, i32
  }
  func.func @transform_1(%arg0: i32) -> (i32, i32) {
    %c0_i32 = arith.constant 0 : i32
    %c0_i32_0 = arith.constant 0 : i32
    return %arg0, %c0_i32 : i32, i32
  }
  func.func @transform_2(%arg0: i32) -> (i32, i32) {
    %c0_i32 = arith.constant 0 : i32
    %c0_i32_0 = arith.constant 0 : i32
    %c0_i32_1 = arith.constant 0 : i32
    return %c0_i32, %c0_i32_0 : i32, i32
  }
  func.func @transform_3(%arg0: i32) -> (i32, i32) {
    %c0_i32 = arith.constant 0 : i32
    %c0_i32_0 = arith.constant 0 : i32
    return %arg0, %c0_i32 : i32, i32
  }
}

</mosaic_0001>

<bundles_post_ra>
// kernel: tpu_custom_call.1
= control target key start
LH: loop header
LB: loop body
LE: loop exit
PB: predicated region body
PF: predicated region fallthrough
CT: control target
= control target key end

     0   :  { %v483_v0 = vmov 0   ;;  %s484_s30 = smov 125   ;;  %vm98_vm0 = vcmask 130048   ;;  %vm160_vm1 = vcmask 523264   ;;  %vm394_vm4 = vcmask 15360   ;;  %s651_s0 = inlined_call_operand.vmem [shape: f32[64,1], index: 0, kind: input, shape index: {}]   ;;  %s652_s2 = inlined_call_operand.vmem [shape: f32[4,16], index: 2, kind: input, shape index: {}]   ;;  %s653_s1 = inlined_call_operand.vmem [shape: bf16[64,64], index: 1, kind: input, shape index: {}]   ;;  %s654_s3 = inlined_call_operand.vmem [shape: f32[64,2], index: 3, kind: output, shape index: {}]  }
   0x1   :  { %462 = vset.pattern.permute.xlu1 %v483_v0  ;;  %461 = vset.pattern.permute.xlu0 %v483_v0  ;;  %v21_v1 = vld [vmem:[%s651_s0 + $0x38] sm:$0xff]  ;;  %v19_v2 = vld [vmem:[%s651_s0 + $0x28] sm:$0xff]  ;;  %v20_v4 = vld [vmem:[%s651_s0 + $0x30] sm:$0xff] }
   0x2   :  { %60 = vperm.xlu0 %461, %v21_v1   ;;  %50 = vperm.xlu1 %462, %v19_v2   ;;  %v17_v3 = vld [vmem:[%s651_s0 + $0x18] sm:$0xff]  ;;  %v18_v5 = vld [vmem:[%s651_s0 + $0x20] sm:$0xff]  ;;  %v16_v6 = vld [vmem:[%s651_s0 + $0x10] sm:$0xff] }
   0x3   :  { %463 = vset.pattern.permute.xlu2 %v483_v0  ;;  %v15_v7 = vld [vmem:[%s651_s0 + $0x8] sm:$0xff]  ;;  %v14_v8 = vld [vmem:[%s651_s0] sm:$0xff] }
   0x4   :  { %40 = vperm.xlu2 %463, %v17_v3   ;;  %v22_v9 = vld [vmem:[%s652_s2] sm:$0xf] }
   0x5   :  { %v533_v10 = vperm.slane %v22_v9, 3  ;;  %v63_v12 = vperm.slane %v22_v9, 0  ;;  %v72_v13 = vperm.slane %v22_v9, 1  ;;  %v89_v20 = vperm.slane %v22_v9, 2 }
   0xa   :  { %55 = vperm.xlu0 %461, %v20_v4   ;;  %45 = vperm.xlu1 %462, %v18_v5  }
   0xc   :  { %35 = vperm.xlu2 %463, %v16_v6  }
  0x12   :  { %30 = vperm.xlu0 %461, %v15_v7   ;;  %25 = vperm.xlu1 %462, %v14_v8  }
  0x1a   :  { %133 = vrot.lane.b32.xlu1 %v533_v10, %s484_s30 }
  0x5e   :  { %v41_v11 = vpop.permute.xlu2 %40 }
  0x5f   :  { %v67_v26 = vmul.f32 %v63_v12, %v41_v11 }
  0x61   :  { %v76_v36 = vadd.f32 %v72_v13, %v67_v26  ;;  %v433_v26 = vld [vmem:[%s653_s1 + $0x18] sm:$0xff]  }
  0x63   :  { %v84_v42 = vmax.f32 %v76_v36, 0.0 }
  0x65   :  { %v93_v52 = vmul.f32 %v89_v20, %v84_v42 }
  0x66   :  { %v36_v23 = vpop.permute.xlu2 %35 }
  0x67   :  { %v66_v29 = vmul.f32 %v63_v12, %v36_v23  ;;  %v108_v56 = vsel %vm98_vm0, %v93_v52, 0.0  ;;  %v431_v23 = vld [vmem:[%s653_s1 + $0x8] sm:$0xff]  }
  0x69   :  { %v75_v37 = vadd.f32 %v72_v13, %v66_v29 }
  0x6b   :  { %v83_v43 = vmax.f32 %v75_v37, 0.0 }
  0x6d   :  { %v92_v53 = vmul.f32 %v89_v20, %v83_v43 }
  0x6f   :  { %v105_v57 = vsel %vm98_vm0, %v92_v53, 0.0 }
  0x74   :  { %v61_v14 = vpop.permute.xlu0 %60  ;;  %v51_v15 = vpop.permute.xlu1 %50 }
  0x75   :  { %v71_v16 = vmul.f32 %v63_v12, %v61_v14  ;;  %v69_v17 = vmul.f32 %v63_v12, %v51_v15 }
  0x77   :  { %v80_v18 = vadd.f32 %v72_v13, %v71_v16  ;;  %v78_v19 = vadd.f32 %v72_v13, %v69_v17 }
  0x79   :  { %v88_v21 = vmax.f32 %v80_v18, 0.0  ;;  %v86_v22 = vmax.f32 %v78_v19, 0.0 }
  0x7b   :  { %v97_v24 = vmul.f32 %v89_v20, %v88_v21  ;;  %v95_v25 = vmul.f32 %v89_v20, %v86_v22  ;;  %v416_v22 = vld [vmem:[%s653_s1] sm:$0xff]  }
  0x7c   :  { %v56_v27 = vpop.permute.xlu0 %55  ;;  %v46_v28 = vpop.permute.xlu1 %45 }
  0x7d   :  { %v70_v30 = vmul.f32 %v63_v12, %v56_v27  ;;  %v68_v31 = vmul.f32 %v63_v12, %v46_v28  ;;  %v120_v32 = vsel %vm98_vm0, %v97_v24, 0.0  ;;  %v114_v33 = vsel %vm98_vm0, %v95_v25, 0.0  ;;  %v432_v25 = vld [vmem:[%s653_s1 + $0x10] sm:$0xff]  }
  0x7e   :  { %121 = vadd.xlane.f32.xlu2 %v120_v32  ;;  %115 = vadd.xlane.f32.xlu1 %v114_v33  ;;  %v421_v28 = vunpack.c.l.bf16 %v431_v23  ;;  %v425_v29 = vunpack.c.l.bf16 %v432_v25  ;;  %v418_v32 = vunpack.c.h.bf16 %v416_v22  ;;  %v426_v33 = vunpack.c.h.bf16 %v432_v25 }
  0x7f   :  { %v79_v34 = vadd.f32 %v72_v13, %v70_v30  ;;  %v77_v35 = vadd.f32 %v72_v13, %v68_v31  ;;  %v429_v30 = vunpack.c.l.bf16 %v433_v26  ;;  %v422_v31 = vunpack.c.h.bf16 %v431_v23 }
  0x81   :  { %v87_v38 = vmax.f32 %v79_v34, 0.0  ;;  %v85_v39 = vmax.f32 %v77_v35, 0.0  ;;  %v430_v34 = vunpack.c.h.bf16 %v433_v26  ;;  %v485_v35 = vmov 2  }
  0x82   :  { %465 = vset.pattern.permute.xlu0 %v485_v35  ;;  %464 = vset.pattern.permute.xlu1 %v485_v35 }
  0x83   :  { %v94_v40 = vmul.f32 %v89_v20, %v85_v39  ;;  %v96_v41 = vmul.f32 %v89_v20, %v87_v38  ;;  %466 = vset.pattern.permute.xlu2 %v485_v35 }
  0x84   :  { %v31_v44 = vpop.permute.xlu0 %30  ;;  %v26_v45 = vpop.permute.xlu1 %25 }
  0x85   :  { %v65_v46 = vmul.f32 %v63_v12, %v31_v44  ;;  %v64_v47 = vmul.f32 %v63_v12, %v26_v45  ;;  %v111_v48 = vsel %vm98_vm0, %v94_v40, 0.0  ;;  %v117_v49 = vsel %vm98_vm0, %v96_v41, 0.0 }
  0x86   :  { %112 = vadd.xlane.f32.xlu2 %v111_v48  ;;  %118 = vadd.xlane.f32.xlu0 %v117_v49 }
  0x87   :  { %v74_v50 = vadd.f32 %v72_v13, %v65_v46  ;;  %v73_v51 = vadd.f32 %v72_v13, %v64_v47 }
  0x89   :  { %v82_v54 = vmax.f32 %v74_v50, 0.0  ;;  %v81_v55 = vmax.f32 %v73_v51, 0.0 }
  0x8b   :  { %v91_v58 = vmul.f32 %v89_v20, %v82_v54  ;;  %v90_v59 = vmul.f32 %v89_v20, %v81_v55 }
  0x8c   :  { %v134_v62 = vpop.permute.xlu1 %133 }
  0x8d   :  { %v102_v60 = vsel %vm98_vm0, %v91_v58, 0.0  ;;  %v99_v61 = vsel %vm98_vm0, %v90_v59, 0.0 }
  0x8e   :  { %109 = vadd.xlane.f32.xlu2 %v108_v56  ;;  %106 = vadd.xlane.f32.xlu0 %v105_v57 }
  0x96   :  { %103 = vadd.xlane.f32.xlu2 %v102_v60  ;;  %100 = vadd.xlane.f32.xlu0 %v99_v61 }
  0xf1   :  { %v122_v63 = vpop.xlane.xlu2 %121  ;;  %v116_v2 = vpop.xlane.xlu1 %115 }
  0xf2   :  { %v131_v0 = vmul.f32 %v533_v10, %v122_v63  ;;  %v129_v5 = vmul.f32 %v533_v10, %v116_v2 }
  0xf4   :  { %v143_v1 = vadd.f32 %v134_v62, %v131_v0  ;;  %v141_v9 = vadd.f32 %v134_v62, %v129_v5 }
  0xf6   :  { %193 = vmatpush.msra.mxu0 %v143_v1  ;;  %434 = vmatpush.msra.mxu1 %v143_v1 }
  0xf7   :  { %435 = vmatpush.msra.mxu2 %v143_v1  ;;  %436 = vmatpush.msra.mxu3 %v143_v1 }
  0xf9   :  { %v113_v3 = vpop.xlane.xlu2 %112  ;;  %v119_v4 = vpop.xlane.xlu0 %118 }
  0xfa   :  { %v130_v6 = vmul.f32 %v533_v10, %v119_v4  ;;  %v128_v7 = vmul.f32 %v533_v10, %v113_v3 }
  0xfc   :  { %v142_v8 = vadd.f32 %v134_v62, %v130_v6  ;;  %v140_v11 = vadd.f32 %v134_v62, %v128_v7 }
  0xfe   :  { %194 = vmatpush.msra.mxu0 %v142_v8  ;;  %437 = vmatpush.msra.mxu1 %v142_v8 }
  0xff   :  { %438 = vmatpush.msra.mxu2 %v142_v8  ;;  %439 = vmatpush.msra.mxu3 %v142_v8 }
 0x100   :  { %195 = vmatpush.msra.mxu0 %v141_v9  ;;  %440 = vmatpush.msra.mxu1 %v141_v9 }
 0x101   :  { %441 = vmatpush.msra.mxu2 %v141_v9  ;;  %442 = vmatpush.msra.mxu3 %v141_v9  ;;  %v110_v12 = vpop.xlane.xlu2 %109  ;;  %v107_v13 = vpop.xlane.xlu0 %106 }
 0x102   :  { %v127_v14 = vmul.f32 %v533_v10, %v110_v12  ;;  %v126_v15 = vmul.f32 %v533_v10, %v107_v13  ;;  %196 = vmatpush.msra.mxu0 %v140_v11  ;;  %443 = vmatpush.msra.mxu1 %v140_v11 }
 0x103   :  { %444 = vmatpush.msra.mxu2 %v140_v11  ;;  %445 = vmatpush.msra.mxu3 %v140_v11 }
 0x104   :  { %v139_v16 = vadd.f32 %v134_v62, %v127_v14  ;;  %v138_v17 = vadd.f32 %v134_v62, %v126_v15 }
 0x106   :  { %197 = vmatpush.msra.mxu0 %v139_v16  ;;  %446 = vmatpush.msra.mxu1 %v139_v16 }
 0x107   :  { %447 = vmatpush.msra.mxu2 %v139_v16  ;;  %448 = vmatpush.msra.mxu3 %v139_v16 }
 0x108   :  { %198 = vmatpush.msra.mxu0 %v138_v17  ;;  %449 = vmatpush.msra.mxu1 %v138_v17 }
 0x109   :  { %450 = vmatpush.msra.mxu2 %v138_v17  ;;  %451 = vmatpush.msra.mxu3 %v138_v17  ;;  %v104_v18 = vpop.xlane.xlu2 %103  ;;  %v101_v19 = vpop.xlane.xlu0 %100 }
 0x10a   :  { %v125_v20 = vmul.f32 %v533_v10, %v104_v18  ;;  %v124_v21 = vmul.f32 %v533_v10, %v101_v19  ;;  %v417_v10 = vunpack.c.l.bf16 %v416_v22 }
 0x10c   :  { %v137_v24 = vadd.f32 %v134_v62, %v125_v20  ;;  %v136_v27 = vadd.f32 %v134_v62, %v124_v21 }
 0x10e   :  { %199 = vmatpush.msra.mxu0 %v137_v24  ;;  %452 = vmatpush.msra.mxu1 %v137_v24 }
 0x10f   :  { %453 = vmatpush.msra.mxu2 %v137_v24  ;;  %454 = vmatpush.msra.mxu3 %v137_v24 }
 0x110   :  { %200 = vmatpush.msra.mxu0 %v136_v27  ;;  %455 = vmatpush.msra.mxu1 %v136_v27 }
 0x111   :  { %456 = vmatpush.msra.mxu2 %v136_v27  ;;  %457 = vmatpush.msra.mxu3 %v136_v27 }
 0x112   :  { %407 = vmatmul.msk.f32.vlgmr.msra.gmra.mxu0 %vm160_vm1, %v417_v10  ;;  %409 = vmatmul.msk.f32.vlgmr.msra.gmra.mxu1 %vm160_vm1, %v421_v28 }
 0x113   :  { %411 = vmatmul.msk.f32.vlgmr.msra.gmra.mxu2 %vm160_vm1, %v425_v29  ;;  %413 = vmatmul.msk.f32.vlgmr.msra.gmra.mxu3 %vm160_vm1, %v429_v30 }
 0x11a   :  { %410 = vmatmul.msk.f32.gmra.mxu1 %vm160_vm1, %v422_v31  ;;  %408 = vmatmul.msk.f32.gmra.mxu0 %vm160_vm1, %v418_v32 }
 0x11b   :  { %412 = vmatmul.msk.f32.gmra.mxu2 %vm160_vm1, %v426_v33  ;;  %414 = vmatmul.msk.f32.gmra.mxu3 %vm160_vm1, %v430_v34 }
 0x18f   :  { %v572_v36 = vpop.f32.mrf.mxu0  ;;  %v574_v37 = vpop.f32.mrf.mxu1 }
 0x190   :  { %v226_v38 = vmax.f32 %v572_v36, 1.0  ;;  %v228_v39 = vmax.f32 %v574_v37, 1.0 }
 0x192   :  { %246 = vperm.xlu0 %465, %v228_v39   ;;  %236 = vperm.xlu1 %464, %v226_v38  }
 0x196   :  { %v214_v40 = vpop.f32.mrf.mxu2  ;;  %v581_v44 = vpop.f32.mrf.mxu3 }
 0x197   :  { %v230_v41 = vmax.f32 %v214_v40, 1.0  ;;  %v578_v42 = vpop.f32.mrf.mxu1  ;;  %v205_v45 = vpop.f32.mrf.mxu0  ;;  %v232_v51 = vmax.f32 %v581_v44, 1.0 }
 0x198   :  { %v229_v43 = vmax.f32 %v578_v42, 1.0  ;;  %v227_v46 = vmax.f32 %v205_v45, 1.0 }
 0x199   :  { %256 = vperm.xlu2 %466, %v230_v41  }
 0x19a   :  { %251 = vperm.xlu1 %464, %v229_v43  }
 0x19e   :  { %v583_v47 = vpop.f32.mrf.mxu2  ;;  %v586_v49 = vpop.f32.mrf.mxu3 }
 0x19f   :  { %v231_v48 = vmax.f32 %v583_v47, 1.0  ;;  %v233_v50 = vmax.f32 %v586_v49, 1.0 }
 0x1a1   :  { %241 = vperm.xlu2 %466, %v227_v46  }
 0x1a2   :  { %261 = vperm.xlu1 %464, %v231_v48  }
 0x1a9   :  { %266 = vperm.xlu2 %466, %v232_v51  }
 0x1aa   :  { %271 = vperm.xlu1 %464, %v233_v50  }
 0x1f3   :  { %v257_v52 = vpop.permute.xlu2 %256 }
 0x1f4   :  { %467 = vrcp.f32 %v257_v52  ;;  %v345_v57 = vand.u32 2147483648, %v257_v52  ;;  %v343_v59 = vand.u32 2147483647, %v257_v52  ;;  %vm339_vm3 = vweird.f32 %v257_v52 }
 0x1f6   :  { %v346_v62 = vor.u32 1.1754944e-38, %v345_v57  ;;  %vm344_vm6 = vcmp.eq.f32.partialorder %v343_v59, 8.507059e+37 }
 0x1fa   :  { %v468_v53 = vpop.eup %467 }
 0x1fb   :  { %v335_v54 = vmul.f32 %v468_v53, %v257_v52  ;;  %v242_v55 = vpop.permute.xlu2 %241  ;;  %vm340_vm2 = vweird.f32 %v468_v53 }
 0x1fc   :  { %469 = vrcp.f32 %v242_v55  ;;  %vm341_vm5 = vmor %vm339_vm3, %vm340_vm2  ;;  %vm294_vm7 = vweird.f32 %v242_v55  ;;  %v298_v3 = vand.u32 2147483647, %v242_v55  ;;  %v300_v4 = vand.u32 2147483648, %v242_v55 }
 0x1fd   :  { %v336_v56 = vsub.f32 1.0, %v335_v54 }
 0x1fe   :  { %v301_v11 = vor.u32 1.1754944e-38, %v300_v4  ;;  %vm299_vm10 = vcmp.eq.f32.partialorder %v298_v3, 8.507059e+37 }
 0x1ff   :  { %v337_v58 = vmul.f32 %v468_v53, %v336_v56 }
 0x201   :  { %v338_v60 = vadd.f32 %v468_v53, %v337_v58 }
 0x202   :  { %v470_v61 = vpop.eup %469 }
 0x203   :  { %v342_v63 = vsel %vm341_vm5, %v468_v53, %v338_v60  ;;  %v290_v0 = vmul.f32 %v470_v61, %v242_v55  ;;  %v267_v1 = vpop.permute.xlu2 %266  ;;  %vm295_vm8 = vweird.f32 %v470_v61 }
 0x204   :  { %v347_v2 = vsel %vm344_vm6, %v346_v62, %v342_v63  ;;  %471 = vrcp.f32 %v267_v1  ;;  %v247_v5 = vpop.permute.xlu0 %246  ;;  %v590_v6 = vpop.permute.xlu1 %236  ;;  %vm296_vm9 = vmor %vm294_vm7, %vm295_vm8  ;;  %v373_v18 = vand.u32 2147483647, %v267_v1  ;;  %v375_v24 = vand.u32 2147483648, %v267_v1 }
 0x205   :  { %v348_v7 = vmul.f32 %v347_v2, %v214_v40  ;;  %v291_v8 = vsub.f32 1.0, %v290_v0  ;;  %473 = vrcp.f32 %v247_v5  ;;  %vm369_vm11 = vweird.f32 %v267_v1 }
 0x206   :  { %475 = vrcp.f32 %v590_v6  ;;  %v313_v10 = vand.u32 2147483647, %v247_v5  ;;  %v315_v28 = vand.u32 2147483648, %v247_v5  ;;  %vm606_vm13 = vcmp.eq.f32.partialorder %v373_v18, 8.507059e+37 }
 0x207   :  { %399 = vst.msk [vmem:[%s654_s3 + $0x20] sm:$0xff] %vm394_vm4, %v348_v7  ;;  %v292_v9 = vmul.f32 %v470_v61, %v291_v8  ;;  %v376_v33 = vor.u32 1.1754944e-38, %v375_v24  ;;  %vm309_vm15 = vweird.f32 %v247_v5  ;;  %v285_v34 = vand.u32 2147483648, %v590_v6 }
 0x208   :  { %v283_v39 = vand.u32 2147483647, %v590_v6  ;;  %vm314_vm3 = vcmp.eq.f32.partialorder %v313_v10, 8.507059e+37  ;;  %v316_v43 = vor.u32 1.1754944e-38, %v315_v28  ;;  %vm279_vm5 = vweird.f32 %v590_v6 }
 0x209   :  { %v293_v12 = vadd.f32 %v470_v61, %v292_v9  ;;  %v286_v54 = vor.u32 1.1754944e-38, %v285_v34 }
 0x20a   :  { %v472_v13 = vpop.eup %471  ;;  %vm284_vm7 = vcmp.eq.f32.partialorder %v283_v39, 8.507059e+37 }
 0x20b   :  { %v474_v14 = vpop.eup %473  ;;  %v297_v15 = vsel %vm296_vm9, %v470_v61, %v293_v12  ;;  %v365_v16 = vmul.f32 %v472_v13, %v267_v1  ;;  %vm370_vm12 = vweird.f32 %v472_v13 }
 0x20c   :  { %v302_v17 = vsel %vm299_vm10, %v301_v11, %v297_v15  ;;  %v305_v19 = vmul.f32 %v474_v14, %v247_v5  ;;  %v598_v20 = vpop.permute.xlu1 %251  ;;  %v476_v21 = vpop.eup %475  ;;  %vm310_vm14 = vweird.f32 %v474_v14  ;;  %vm371_vm0 = vmor %vm369_vm11, %vm370_vm12 }
 0x20d   :  { %v303_v22 = vmul.f32 %v302_v17, %v205_v45  ;;  %v366_v23 = vsub.f32 1.0, %v365_v16  ;;  %477 = vrcp.f32 %v598_v20  ;;  %v275_v26 = vmul.f32 %v476_v21, %v590_v6  ;;  %vm311_vm2 = vmor %vm309_vm15, %vm310_vm14 }
 0x20e   :  { %v306_v25 = vsub.f32 1.0, %v305_v19  ;;  %vm280_vm1 = vweird.f32 %v476_v21  ;;  %v330_v59 = vand.u32 2147483648, %v598_v20  ;;  %vm324_vm9 = vweird.f32 %v598_v20 }
 0x20f   :  { %396 = vst.msk [vmem:[%s654_s3 + $0x8] sm:$0xff] %vm394_vm4, %v303_v22  ;;  %v367_v27 = vmul.f32 %v472_v13, %v366_v23  ;;  %v276_v31 = vsub.f32 1.0, %v275_v26  ;;  %vm281_vm6 = vmor %vm279_vm5, %vm280_vm1 }
 0x210   :  { %v307_v30 = vmul.f32 %v474_v14, %v306_v25  ;;  %v331_v63 = vor.u32 1.1754944e-38, %v330_v59 }
 0x211   :  { %v368_v32 = vadd.f32 %v472_v13, %v367_v27  ;;  %v277_v38 = vmul.f32 %v476_v21, %v276_v31 }
 0x212   :  { %v308_v35 = vadd.f32 %v474_v14, %v307_v30 }
 0x213   :  { %v478_v40 = vpop.eup %477  ;;  %v372_v41 = vsel %vm371_vm0, %v472_v13, %v368_v32  ;;  %v278_v48 = vadd.f32 %v476_v21, %v277_v38 }
 0x214   :  { %v377_v45 = vsel %vm606_vm13, %v376_v33, %v372_v41  ;;  %v312_v46 = vsel %vm311_vm2, %v474_v14, %v308_v35  ;;  %v320_v50 = vmul.f32 %v478_v40, %v598_v20  ;;  %v262_v51 = vpop.permute.xlu1 %261  ;;  %vm325_vm8 = vweird.f32 %v478_v40 }
 0x215   :  { %v378_v52 = vmul.f32 %v377_v45, %v581_v44  ;;  %v317_v53 = vsel %vm314_vm3, %v316_v43, %v312_v46  ;;  %479 = vrcp.f32 %v262_v51  ;;  %v282_v56 = vsel %vm281_vm6, %v476_v21, %v278_v48  ;;  %vm326_vm10 = vmor %vm324_vm9, %vm325_vm8 }
 0x216   :  { %v318_v55 = vmul.f32 %v317_v53, %v574_v37  ;;  %v321_v57 = vsub.f32 1.0, %v320_v50  ;;  %v287_v58 = vsel %vm284_vm7, %v286_v54, %v282_v56  ;;  %v328_v37 = vand.u32 2147483647, %v598_v20 }
 0x217   :  { %401 = vst.msk [vmem:[%s654_s3 + $0x30] sm:$0xff] %vm394_vm4, %v378_v52  ;;  %v288_v44 = vmul.f32 %v287_v58, %v572_v36  ;;  %v360_v5 = vand.u32 2147483648, %v262_v51  ;;  %v358_v7 = vand.u32 2147483647, %v262_v51  ;;  %vm354_vm13 = vweird.f32 %v262_v51 }
 0x218   :  { %397 = vst.msk [vmem:[%s654_s3 + $0x10] sm:$0xff] %vm394_vm4, %v318_v55  ;;  %v322_v60 = vmul.f32 %v478_v40, %v321_v57  ;;  %vm329_vm11 = vcmp.eq.f32.partialorder %v328_v37, 8.507059e+37 }
 0x219   :  { %395 = vst.msk [vmem:[%s654_s3] sm:$0xff] %vm394_vm4, %v288_v44  ;;  %v361_v11 = vor.u32 1.1754944e-38, %v360_v5  ;;  %vm359_vm15 = vcmp.eq.f32.partialorder %v358_v7, 8.507059e+37 }
 0x21a   :  { %v323_v61 = vadd.f32 %v478_v40, %v322_v60 }
 0x21b   :  { %v480_v62 = vpop.eup %479 }
 0x21c   :  { %v327_v0 = vsel %vm326_vm10, %v478_v40, %v323_v61  ;;  %v350_v1 = vmul.f32 %v480_v62, %v262_v51  ;;  %v272_v2 = vpop.permute.xlu1 %271  ;;  %vm355_vm12 = vweird.f32 %v480_v62 }
 0x21d   :  { %v332_v36 = vsel %vm329_vm11, %v331_v63, %v327_v0  ;;  %481 = vrcp.f32 %v272_v2  ;;  %vm356_vm14 = vmor %vm354_vm13, %vm355_vm12  ;;  %v390_v16 = vand.u32 2147483648, %v272_v2  ;;  %v388_v18 = vand.u32 2147483647, %v272_v2 }
 0x21e   :  { %v333_v3 = vmul.f32 %v332_v36, %v578_v42  ;;  %v351_v4 = vsub.f32 1.0, %v350_v1  ;;  %vm384_vm1 = vweird.f32 %v272_v2 }
 0x21f   :  { %v391_v20 = vor.u32 1.1754944e-38, %v390_v16  ;;  %vm389_vm3 = vcmp.eq.f32.partialorder %v388_v18, 8.507059e+37 }
 0x220   :  { %398 = vst.msk [vmem:[%s654_s3 + $0x18] sm:$0xff] %vm394_vm4, %v333_v3  ;;  %v352_v6 = vmul.f32 %v480_v62, %v351_v4 }
 0x222   :  { %v353_v8 = vadd.f32 %v480_v62, %v352_v6 }
 0x223   :  { %v482_v9 = vpop.eup %481 }
 0x224   :  { %v357_v12 = vsel %vm356_vm14, %v480_v62, %v353_v8  ;;  %v380_v13 = vmul.f32 %v482_v9, %v272_v2  ;;  %vm385_vm0 = vweird.f32 %v482_v9 }
 0x225   :  { %v362_v14 = vsel %vm359_vm15, %v361_v11, %v357_v12  ;;  %vm386_vm2 = vmor %vm384_vm1, %vm385_vm0 }
 0x226   :  { %v363_v42 = vmul.f32 %v362_v14, %v583_v47  ;;  %v381_v15 = vsub.f32 1.0, %v380_v13 }
 0x228   :  { %400 = vst.msk [vmem:[%s654_s3 + $0x28] sm:$0xff] %vm394_vm4, %v363_v42  ;;  %v382_v17 = vmul.f32 %v482_v9, %v381_v15 }
 0x22a   :  { %v383_v19 = vadd.f32 %v482_v9, %v382_v17 }
 0x22c   :  { %v387_v21 = vsel %vm386_vm2, %v482_v9, %v383_v19 }
 0x22d   :  { %v392_v22 = vsel %vm389_vm3, %v391_v20, %v387_v21 }
 0x22e   :  { %v393_v23 = vmul.f32 %v392_v22, %v586_v49 }
 0x230   :  { %402 = vst.msk [vmem:[%s654_s3 + $0x38] sm:$0xff] %vm394_vm4, %v393_v23 }

</bundles_post_ra>
